<compile_context>
chip_gen: v7x
topology: tpu7x:2x2x1
jax: 0.10.0
libtpu: 0.0.40
codegen_flags: <defaults>
</compile_context>

<pallas_src>
import functools

import jax
import jax.numpy as jnp
from jax.experimental import pallas as pl
from jax.experimental.pallas import tpu as pltpu

LANE = 128
SUBLANE = 8
VMEM_LIMIT = 64 * 1024 * 1024


def _round_up(x, m):
    return ((x + m - 1) // m) * m


def _pad2(x, rows, cols):
    r, c = x.shape
    return jnp.pad(x, ((0, rows - r), (0, cols - c)))


# ---------------------------------------------------------------------------
# Kernel 1: per-layer feature transform  XW = H @ W   (tiled over node rows)
# ---------------------------------------------------------------------------
def _xw_kernel(h_ref, w_ref, xw_ref):
    xw_ref[...] = jnp.dot(
        h_ref[...], w_ref[...], preferred_element_type=jnp.float32
    ).astype(xw_ref.dtype)


def _feature_transform(h, w, *, tm):
    n_pad, f_in = h.shape
    f_out = w.shape[1]
    return pl.pallas_call(
        _xw_kernel,
        out_shape=jax.ShapeDtypeStruct((n_pad, f_out), jnp.bfloat16),
        grid_spec=pltpu.PrefetchScalarGridSpec(
            num_scalar_prefetch=0,
            grid=(n_pad // tm,),
            in_specs=[
                pl.BlockSpec((tm, f_in), lambda i: (i, 0)),
                pl.BlockSpec((f_in, f_out), lambda i: (0, 0)),
            ],
            out_specs=pl.BlockSpec((tm, f_out), lambda i: (i, 0)),
        ),
        compiler_params=pltpu.CompilerParams(
            dimension_semantics=("parallel",),
            vmem_limit_bytes=VMEM_LIMIT,
        ),
    )(h, w)


# ---------------------------------------------------------------------------
# Kernel 2: tiled aggregation  H_next = relu(A_hat @ XW + b)
#   grid = (row blocks of A, contraction blocks of A); A streams from HBM,
#   XW stays VMEM-resident, accumulator in f32 VMEM scratch.
# ---------------------------------------------------------------------------
def _agg_relu_kernel(a_ref, xw_ref, b_ref, out_ref, acc_ref, *, tk):
    k = pl.program_id(1)

    @pl.when(k == 0)
    def _():
        acc_ref[...] = jnp.zeros_like(acc_ref)

    start = pl.multiple_of(k * tk, tk)
    acc_ref[...] += jnp.dot(
        a_ref[...], xw_ref[pl.ds(start, tk), :],
        preferred_element_type=jnp.float32,
    )

    @pl.when(k == pl.num_programs(1) - 1)
    def _():
        out_ref[...] = jnp.maximum(acc_ref[...] + b_ref[...], 0.0).astype(
            out_ref.dtype
        )


def _aggregate_relu(a_hat, xw, bias, *, tm, tk):
    n_pad = a_hat.shape[0]
    h_out = xw.shape[1]
    kernel = functools.partial(_agg_relu_kernel, tk=tk)
    return pl.pallas_call(
        kernel,
        out_shape=jax.ShapeDtypeStruct((n_pad, h_out), jnp.bfloat16),
        grid_spec=pltpu.PrefetchScalarGridSpec(
            num_scalar_prefetch=0,
            grid=(n_pad // tm, n_pad // tk),
            in_specs=[
                pl.BlockSpec((tm, tk), lambda i, k: (i, k)),        # A block (bf16)
                pl.BlockSpec((n_pad, h_out), lambda i, k: (0, 0)),  # XW resident
                pl.BlockSpec((1, h_out), lambda i, k: (0, 0)),      # bias
            ],
            out_specs=pl.BlockSpec((tm, h_out), lambda i, k: (i, 0)),
            scratch_shapes=[pltpu.VMEM((tm, h_out), jnp.float32)],
        ),
        compiler_params=pltpu.CompilerParams(
            dimension_semantics=("parallel", "arbitrary"),
            vmem_limit_bytes=VMEM_LIMIT,
        ),
    )(a_hat, xw, bias)


# ---------------------------------------------------------------------------
# Kernel 3: fused global max/mean pooling + output Linear
#   grid over row blocks of H; mean via MXU matmul mask^T @ H, max via a
#   vectorized masked running max; final linear uses split w_out halves.
# ---------------------------------------------------------------------------
def _pool_head_kernel(h_ref, mask_ref, maskt_ref, cnt_ref, wmax_ref, wmean_ref,
                      bo_ref, out_ref, max_acc, sum_acc):
    i = pl.program_id(0)

    @pl.when(i == 0)
    def _():
        max_acc[...] = jnp.full_like(max_acc, -1e30)
        sum_acc[...] = jnp.zeros_like(sum_acc)

    h = h_ref[...].astype(jnp.float32)          # [tm, Hp]  (VPU math in f32)
    m = mask_ref[...]                           # [tm, Bp]
    mt = maskt_ref[...]                         # [Bp, tm]

    # mean-pool numerator on the MXU: mask^T @ H  -> [Bp, Hp]
    sum_acc[...] += jnp.dot(mt, h, preferred_element_type=jnp.float32)

    # segment max: broadcast to [tm, Bp, Hp], reduce over nodes (axis 0)
    masked = jnp.where(m[:, :, None] > 0.0, h[:, None, :], -1e30)
    max_acc[...] = jnp.maximum(max_acc[...], jnp.max(masked, axis=0))

    @pl.when(i == pl.num_programs(0) - 1)
    def _():
        cnt = cnt_ref[...]                                   # [Bp, Hp]
        mean_p = sum_acc[...] / jnp.maximum(cnt, 1.0)        # empty-graph safe
        max_p = jnp.where(cnt > 0.0, max_acc[...], 0.0)
        out_ref[...] = (
            jnp.dot(max_p, wmax_ref[...], preferred_element_type=jnp.float32)
            + jnp.dot(mean_p, wmean_ref[...], preferred_element_type=jnp.float32)
            + bo_ref[...]
        )


def _pool_head(h, mask, mask_t, cnt_b, w_max, w_mean, b_out, *, tm):
    n_pad, hp = h.shape
    bp = mask.shape[1]
    cp = w_max.shape[1]
    return pl.pallas_call(
        _pool_head_kernel,
        out_shape=jax.ShapeDtypeStruct((bp, cp), jnp.float32),
        grid_spec=pltpu.PrefetchScalarGridSpec(
            num_scalar_prefetch=0,
            grid=(n_pad // tm,),
            in_specs=[
                pl.BlockSpec((tm, hp), lambda i: (i, 0)),    # H row block
                pl.BlockSpec((tm, bp), lambda i: (i, 0)),    # mask row block
                pl.BlockSpec((bp, tm), lambda i: (0, i)),    # mask^T col block
                pl.BlockSpec((bp, hp), lambda i: (0, 0)),    # per-graph counts
                pl.BlockSpec((hp, cp), lambda i: (0, 0)),    # w_out (max half)
                pl.BlockSpec((hp, cp), lambda i: (0, 0)),    # w_out (mean half)
                pl.BlockSpec((1, cp), lambda i: (0, 0)),     # b_out
            ],
            out_specs=pl.BlockSpec((bp, cp), lambda i: (0, 0)),
            scratch_shapes=[pltpu.VMEM((bp, hp), jnp.float32),
                            pltpu.VMEM((bp, hp), jnp.float32)],
        ),
        compiler_params=pltpu.CompilerParams(
            dimension_semantics=("arbitrary",),
            vmem_limit_bytes=VMEM_LIMIT,
        ),
    )(h, mask, mask_t, cnt_b, w_max, w_mean, b_out)


# ---------------------------------------------------------------------------
# Forward pass wrapper
# ---------------------------------------------------------------------------
def gcn_forward(x, a_hat, mask, params):
    """x: [N, F] f32, a_hat: [N, N] f32, mask: [N, B] 0/1 graph membership."""
    n, f = x.shape
    num_graphs = mask.shape[1]
    h_dim = params["w0"].shape[1]
    n_classes = params["b_out"].shape[-1]

    # padded / tiled sizes (lane-dense matmuls, tiles re-derived per N)
    hp = _round_up(h_dim, LANE)
    fp = _round_up(f, SUBLANE)
    bp = _round_up(num_graphs, SUBLANE)
    cp = _round_up(n_classes, LANE)
    if n <= 256:
        n_pad = _round_up(n, LANE)
        tm = tk = n_pad
    else:
        tm, tk = 256, 512          # modest tiles: fits v7x 64 MiB with headroom
        n_pad = _round_up(n, tk)

    # pad + cast large operands (bf16 halves HBM/VMEM traffic of A_hat, H)
    a_p = _pad2(a_hat, n_pad, n_pad).astype(jnp.bfloat16)
    x_p = _pad2(x, n_pad, fp).astype(jnp.bfloat16)
    mask_p = _pad2(mask, n_pad, bp).astype(jnp.float32)
    mask_t = mask_p.T
    cnt = jnp.sum(mask_p, axis=0)                                  # [Bp]
    cnt_b = jnp.broadcast_to(cnt[:, None], (bp, hp)).astype(jnp.float32)

    def pad_w(name, rows, cols):
        return _pad2(params[name], rows, cols).astype(jnp.bfloat16)

    def pad_bias(name, cols):
        return _pad2(params[name].reshape(1, -1), 1, cols).astype(jnp.float32)

    w0 = pad_w("w0", fp, hp)
    w1 = pad_w("w1", hp, hp)
    w2 = pad_w("w2", hp, hp)
    w3 = pad_w("w3", hp, hp)
    b0, b1, b2, b3 = (pad_bias(k, hp) for k in ("b0", "b1", "b2", "b3"))

    w_out = params["w_out"]                      # [2H, C] -> split max / mean
    w_max = _pad2(w_out[:h_dim], hp, cp).astype(jnp.float32)
    w_mean = _pad2(w_out[h_dim:], hp, cp).astype(jnp.float32)
    b_out = pad_bias("b_out", cp)

    # 4 x (feature transform ; tiled aggregation + ReLU)
    h = x_p
    for w, bias in ((w0, b0), (w1, b1), (w2, b2), (w3, b3)):
        xw = _feature_transform(h, w, tm=tm)
        h = _aggregate_relu(a_p, xw, bias, tm=tm, tk=tk)

    # fused pooling + output Linear, then strip padding
    out_p = _pool_head(h, mask_p, mask_t, cnt_b, w_max, w_mean, b_out, tm=tm)
    return out_p[:num_graphs, :n_classes]


# ---------------------------------------------------------------------------
# Plain-JAX glue: normalized adjacency + parameter init
# ---------------------------------------------------------------------------
def normalized_adjacency(edge_index, num_nodes):
    """A_hat = D^{-1/2} (A + I) D^{-1/2} (GCNConv symmetric normalization)."""
    src, dst = edge_index[0], edge_index[1]
    a = jnp.zeros((num_nodes, num_nodes), jnp.float32)
    a = a.at[dst, src].set(1.0)                        # duplicate edges collapse to 1
    a = a + jnp.eye(num_nodes, dtype=jnp.float32)      # self-loops
    deg = jnp.sum(a, axis=1)
    d_inv_sqrt = 1.0 / jnp.sqrt(deg)
    return a * d_inv_sqrt[:, None] * d_inv_sqrt[None, :]


def init_params(key, num_features, embedding_size, out_features):
    ks = jax.random.split(key, 5)

    def glorot(k, shape):
        fan_in, fan_out = shape
        lim = jnp.sqrt(6.0 / (fan_in + fan_out))
        return jax.random.uniform(k, shape, jnp.float32, -lim, lim)

    h = embedding_size
    return {
        "w0": glorot(ks[0], (num_features, h)), "b0": jnp.zeros((1, h), jnp.float32),
        "w1": glorot(ks[1], (h, h)),            "b1": jnp.zeros((1, h), jnp.float32),
        "w2": glorot(ks[2], (h, h)),            "b2": jnp.zeros((1, h), jnp.float32),
        "w3": glorot(ks[3], (h, h)),            "b3": jnp.zeros((1, h), jnp.float32),
        "w_out": glorot(ks[4], (2 * h, out_features)),
        "b_out": jnp.zeros((1, out_features), jnp.float32),
    }


if __name__ == "__main__":
    # Small, deterministic problem: 2 graphs of 8 nodes each (N=16).
    num_features, embedding_size, out_features = 4, 32, 3
    nodes_per_graph, num_graphs = 8, 2
    num_nodes = nodes_per_graph * num_graphs

    key = jax.random.PRNGKey(0)
    k_x, k_p = jax.random.split(key)

    x = jax.random.normal(k_x, (num_nodes, num_features), jnp.float32)

    # edge_index: undirected ring within each graph (both directions listed).
    src, dst = [], []
    for g in range(num_graphs):
        base = g * nodes_per_graph
        for i in range(nodes_per_graph):
            a_node = base + i
            b_node = base + (i + 1) % nodes_per_graph
            src += [a_node, b_node]
            dst += [b_node, a_node]
    edge_index = jnp.array([src, dst], dtype=jnp.int32)   # [2, E]

    # batch_index -> one-hot graph-membership mask [N, B]
    batch_index = jnp.repeat(jnp.arange(num_graphs, dtype=jnp.int32),
                             nodes_per_graph)
    mask = jax.nn.one_hot(batch_index, num_graphs, dtype=jnp.float32)

    a_hat = normalized_adjacency(edge_index, num_nodes)
    params = init_params(k_p, num_features, embedding_size, out_features)

    out = gcn_forward(x, a_hat, mask, params)
    jax.block_until_ready(out)
    assert out.shape == (num_graphs, out_features)
    print("KERNEL_OK")
</pallas_src>

<mosaic_0001>
module attributes {stable_mosaic.version = 11 : i64} {
  func.func @_xw_kernel(%arg0: i32, %arg1: memref<128x8xbf16, #tpu.memory_space<vmem>>, %arg2: memref<8x128xbf16, #tpu.memory_space<vmem>>, %arg3: memref<128x128xbf16, #tpu.memory_space<vmem>>) attributes {dimension_semantics = [#tpu.dimension_semantics<parallel>], iteration_bounds = array<i64: 1>, scalar_prefetch = 0 : i64, scratch_operands = 0 : i64, tpu.core_type = #tpu.core_type<tc>, window_params = [{transform_indices = @transform_0, window_bounds = array<i64: 128, 8>}, {pipeline_mode = #tpu.pipeline_mode<synchronous>, transform_indices = @transform_1, window_bounds = array<i64: 8, 128>}, {transform_indices = @transform_2, window_bounds = array<i64: 128, 128>}]} {
    %c0 = arith.constant 0 : index
    %c0_0 = arith.constant 0 : index
    %0 = vector.load %arg1[%c0, %c0_0] : memref<128x8xbf16, #tpu.memory_space<vmem>>, vector<128x8xbf16>
    %c0_1 = arith.constant 0 : index
    %c0_2 = arith.constant 0 : index
    %1 = vector.load %arg2[%c0_1, %c0_2] : memref<8x128xbf16, #tpu.memory_space<vmem>>, vector<8x128xbf16>
    %cst = arith.constant dense<0.000000e+00> : vector<128x128xf32>
    %2 = tpu.matmul %0, %1, %cst {dimension_numbers = #tpu.dot_dimension_numbers<[1], [0], [0], [1], [0, 0, 1, 1], [], []>} : vector<128x8xbf16>, vector<8x128xbf16>, vector<128x128xf32> -> vector<128x128xf32>
    %3 = arith.truncf %2 : vector<128x128xf32> to vector<128x128xbf16>
    %c0_3 = arith.constant 0 : index
    %c0_4 = arith.constant 0 : index
    %4 = vector.load %arg3[%c0_3, %c0_4] : memref<128x128xbf16, #tpu.memory_space<vmem>>, vector<128x128xbf16>
    tpu.vector_store %arg3[%c0_3, %c0_4], %3 {strides = array<i32>} : memref<128x128xbf16, #tpu.memory_space<vmem>>, vector<128x128xbf16>,
    return
  }
  func.func @transform_0(%arg0: i32) -> (i32, i32) {
    %c0_i32 = arith.constant 0 : i32
    %c0_i32_0 = arith.constant 0 : i32
    return %arg0, %c0_i32 : i32, i32
  }
  func.func @transform_1(%arg0: i32) -> (i32, i32) {
    %c0_i32 = arith.constant 0 : i32
    %c0_i32_0 = arith.constant 0 : i32
    %c0_i32_1 = arith.constant 0 : i32
    return %c0_i32, %c0_i32_0 : i32, i32
  }
  func.func @transform_2(%arg0: i32) -> (i32, i32) {
    %c0_i32 = arith.constant 0 : i32
    %c0_i32_0 = arith.constant 0 : i32
    return %arg0, %c0_i32 : i32, i32
  }
}

</mosaic_0001>

<bundles_post_ra>
// kernel: tpu_custom_call.1
= control target key start
LH: loop header
LB: loop body
LE: loop exit
PB: predicated region body
PF: predicated region fallthrough
CT: control target
= control target key end

     0   :  { %7 = vsyncpa [#allocation3], 0  ;;  %s601_s0 = inlined_call_operand.hbm [shape: bf16[128,8], index: 0, kind: input, shape index: {}]   ;;  %s602_s1 = inlined_call_operand.hbm [shape: bf16[8,128], index: 1, kind: input, shape index: {}]   ;;  %s603_s2 = inlined_call_operand.hbm [shape: bf16[128,128], index: 2, kind: output, shape index: {}]  }
   0x1   :  { %8 = vsyncpa [#allocation6], 0 }
   0x2   :  { %9 = vsyncpa [#allocation4], 0  ;;  %s531_s9 = smov [#allocation2]   ;;  %s459_s13 = scalar_lea.hbm %s601_s0, 1024 }
   0x3   :  { %s15_s10 = sshll.u32 %s531_s9, 4  ;;  %p460_p0 = scmp.ne.s32.totalorder %s601_s0, %s459_s13  ;;  %s16_s10 = int_to_ptr.vmem [resolvable:$true] %s15_s10 }
   0x4   :  { %p463_p1 = scmp.lt.u32.totalorder %s459_s13, %s601_s0 }
   0x6   :  { %p465_p2 = pnand %p463_p1, %p460_p0 }
   0x8   :  { %468 = shalt.err (!%p465_p2)
}
   0x9   :  { %s469_s18 = scalar_lea.vmem %s16_s10, 1024  ;;  %p474_p4 = scmp.lt.s32.totalorder %s16_s10, %s16_s10 }
   0xa   :  { %p470_p3 = scmp.ne.s32.totalorder %s16_s10, %s469_s18  ;;  %p475_p5 = scmp.lt.s32.totalorder %s469_s18, %s469_s18 }
   0xc   :  { %p476_p6 = por %p475_p5, %p474_p4 }
   0xe   :  { %p477_p7 = pnand %p476_p6, %p470_p3 }
  0x10   :  { %480 = shalt.err (!%p477_p7)
}
  0x11   :  { %s532_s19 = smov 64   ;;  %s533_s20 = smov 4  }
  0x12   :  { %21 = dma.hbm_to_vmem [thread:$0]  %s601_s0, 1024, %s16_s10, [#allocation3], %s532_s19, %s532_s19, %s533_s20  }
  0x13   :  { %s534_s23 = smov [#allocation5]   ;;  %s481_s27 = scalar_lea.hbm %s602_s1, 64 }
  0x14   :  { %s28_s24 = sshll.u32 %s534_s23, 4  ;;  %p482_p8 = scmp.ne.s32.totalorder %s602_s1, %s481_s27  ;;  %s29_s24 = int_to_ptr.vmem [resolvable:$true] %s28_s24 }
  0x15   :  { %p485_p9 = scmp.lt.u32.totalorder %s481_s27, %s602_s1 }
  0x17   :  { %p487_p10 = pnand %p485_p9, %p482_p8 }
  0x19   :  { %490 = shalt.err (!%p487_p10)
}
  0x1a   :  { %s491_s4 = scalar_lea.vmem %s29_s24, 64  ;;  %p496_p12 = scmp.lt.s32.totalorder %s29_s24, %s29_s24 }
  0x1b   :  { %p492_p11 = scmp.ne.s32.totalorder %s29_s24, %s491_s4  ;;  %p497_p13 = scmp.lt.s32.totalorder %s491_s4, %s491_s4 }
  0x1d   :  { %p498_p0 = por %p497_p13, %p496_p12 }
  0x1f   :  { %p499_p1 = pnand %p498_p0, %p492_p11 }
  0x21   :  { %502 = shalt.err (!%p499_p1)
}
  0x22   :  { %31 = dma.hbm_to_vmem [thread:$0]  %s602_s1, 64, %s29_s24, [#allocation6]  }
  0x23   :  { %525 = dma.done.wait [#allocation3], 1024  }
  0x24   :  { %526 = vsyncadd [#allocation3], 4294966272 }
  0x25   :  { %527 = dma.done.wait [#allocation6], 64  }
  0x26   :  { %528 = vsyncadd [#allocation6], 4294967232  ;;  %vm121_vm0 = vcmask 1043456   ;;  %vm96_vm1 = vcmask 64512   ;;  %v55_v0 = vld [vmem:[#allocation5] sm:$0xf] }
  0x27   :  { %444 = vmatprep.subr.msk.bf16.mxu0 %vm121_vm0, %v55_v0  ;;  %445 = vmatprep.subr.msk.bf16.mxu1 %vm121_vm0, %v55_v0  ;;  %v123_v1 = vsel %vm121_vm0, %v55_v0, 0  ;;  %v451_v2 = vld [vmem:[#allocation2] sm:$0xff]   ;;  %v453_v4 = vld [vmem:[#allocation2 + $0x8] sm:$0xff]   ;;  %v455_v6 = vld [vmem:[#allocation2 + $0x10] sm:$0xff]   ;;  %s535_s1 = smov [#allocation7]  }
  0x28   :  { %425 = vmatpush3.bf16.msra.mxu0 %v123_v1  ;;  %443 = vmatpush3.bf16.msra.mxu1 %v123_v1  ;;  %v452_v3 = vld [vmem:[#allocation2 + $0x20] sm:$0xff]   ;;  %v454_v5 = vld [vmem:[#allocation2 + $0x28] sm:$0xff]   ;;  %v456_v7 = vld [vmem:[#allocation2 + $0x30] sm:$0xff]   ;;  %s307_s6 = sshll.u32 %s535_s1, 4  ;;  %s308_s6 = int_to_ptr.vmem [resolvable:$true] %s307_s6 }
  0x29   :  { %426 = vmatprep.mubr.msk.bf16.mxu0 %vm96_vm1, %v451_v2  ;;  %434 = vmatprep.mubr.msk.bf16.mxu1 %vm96_vm1, %v452_v3  ;;  %v457_v8 = vld [vmem:[#allocation2 + $0x18] sm:$0xff]   ;;  %s503_s7 = scalar_lea.vmem %s308_s6, 1024  ;;  %p508_p3 = scmp.lt.s32.totalorder %s308_s6, %s308_s6 }
  0x2a   :  { %v458_v9 = vld [vmem:[#allocation2 + $0x38] sm:$0xff]   ;;  %p504_p2 = scmp.ne.s32.totalorder %s308_s6, %s503_s7  ;;  %p509_p4 = scmp.lt.s32.totalorder %s503_s7, %s503_s7 }
  0x2b   :  { %427 = vmatmul.mubr.msk.bf16.vlgmr.msra.gmra.mrb[0].mxu0 %vm96_vm1, %v453_v4  ;;  %435 = vmatmul.mubr.msk.bf16.vlgmr.msra.gmra.mrb[0].mxu1 %vm96_vm1, %v454_v5 }
  0x2c   :  { %430 = vmatprep.mubr.msk.bf16.mxu0 %vm96_vm1, %v455_v6  ;;  %438 = vmatprep.mubr.msk.bf16.mxu1 %vm96_vm1, %v456_v7  ;;  %p510_p5 = por %p509_p4, %p508_p3 }
  0x2e   :  { %p511_p6 = pnand %p510_p5, %p504_p2 }
  0x33   :  { %431 = vmatmul.mubr.msk.bf16.gmra.mrb[4].mxu0 %vm96_vm1, %v457_v8  ;;  %439 = vmatmul.mubr.msk.bf16.gmra.mrb[4].mxu1 %vm96_vm1, %v458_v9 }
  0xfe   :  { %v428_v10 = vpop.f32.mrb[0].mxu0  ;;  %v436_v11 = vpop.f32.mrb[0].mxu1 }
  0xff   :  { %v159_v12 = vpop.f32.mrb[1].mxu0  ;;  %v191_v13 = vpop.f32.mrb[1].mxu1 }
 0x100   :  { %v429_v14 = vpop.f32.mrb[2].mxu0  ;;  %v437_v16 = vpop.f32.mrb[2].mxu1 }
 0x101   :  { %v376_v15 = vpack.c.bf16 %v429_v14, %v428_v10  ;;  %v162_v17 = vpop.f32.mrb[3].mxu0  ;;  %v396_v18 = vpack.c.bf16 %v437_v16, %v436_v11  ;;  %v194_v20 = vpop.f32.mrb[3].mxu1 }
 0x102   :  { %v371_v19 = vpack.c.bf16 %v162_v17, %v159_v12  ;;  %v391_v21 = vpack.c.bf16 %v194_v20, %v191_v13 }
 0x103   :  { %408 = vst [vmem:[#allocation7 + $0x8] sm:$0xff] %v376_v15   ;;  %412 = vst [vmem:[#allocation7 + $0x28] sm:$0xff] %v396_v18  }
 0x104   :  { %372 = vst [vmem:[#allocation7] sm:$0xff] %v371_v19   ;;  %411 = vst [vmem:[#allocation7 + $0x20] sm:$0xff] %v391_v21  }
 0x106   :  { %v432_v22 = vpop.f32.mrb[4].mxu0  ;;  %v440_v23 = vpop.f32.mrb[4].mxu1 }
 0x107   :  { %v175_v24 = vpop.f32.mrb[5].mxu0  ;;  %v207_v25 = vpop.f32.mrb[5].mxu1 }
 0x108   :  { %v433_v26 = vpop.f32.mrb[6].mxu0  ;;  %v441_v28 = vpop.f32.mrb[6].mxu1 }
 0x109   :  { %v386_v27 = vpack.c.bf16 %v433_v26, %v432_v22  ;;  %v178_v29 = vpop.f32.mrb[7].mxu0  ;;  %v406_v30 = vpack.c.bf16 %v441_v28, %v440_v23  ;;  %v210_v32 = vpop.f32.mrb[7].mxu1 }
 0x10a   :  { %v381_v31 = vpack.c.bf16 %v178_v29, %v175_v24  ;;  %v401_v33 = vpack.c.bf16 %v210_v32, %v207_v25 }
 0x10b   :  { %410 = vst [vmem:[#allocation7 + $0x18] sm:$0xff] %v386_v27   ;;  %414 = vst [vmem:[#allocation7 + $0x38] sm:$0xff] %v406_v30  }
 0x10c   :  { %409 = vst [vmem:[#allocation7 + $0x10] sm:$0xff] %v381_v31   ;;  %413 = vst [vmem:[#allocation7 + $0x30] sm:$0xff] %v401_v33  }
 0x10d   :  { %514 = shalt.err (!%p511_p6)
}
 0x10e   :  { %s515_s10 = scalar_lea.hbm %s603_s2, 1024 }
 0x10f   :  { %p516_p7 = scmp.ne.s32.totalorder %s603_s2, %s515_s10  ;;  %p519_p8 = scmp.lt.u32.totalorder %s515_s10, %s603_s2 }
 0x111   :  { %p521_p9 = pnand %p519_p8, %p516_p7 }
 0x113   :  { %524 = shalt.err (!%p521_p9)
}
 0x114   :  { %313 = dma.vmem_to_hbm [thread:$0]  %s308_s6, 1024, %s603_s2, [#allocation4], %s532_s19, %s532_s19, %s533_s20  }
 0x115   :  { %529 = dma.done.wait [#allocation4], 1024  }
 0x116   :  { %530 = vsyncadd [#allocation4], 4294966272 }
 0x117   :  { %317 = vsyncpa [#allocation3], 1 }
 0x118   :  { %318 = vsyncpa [#allocation6], 1 }
 0x119   :  { %319 = vsyncpa [#allocation4], 1 }

</bundles_post_ra>
